<compile_context>
chip_gen: v7x
topology: tpu7x:2x2x1
jax: 0.10.0
libtpu: 0.0.40
codegen_flags: <defaults>
</compile_context>

<pallas_src>
import functools

import jax
import jax.numpy as jnp
from jax.experimental import pallas as pl
from jax.experimental.pallas import tpu as pltpu


def _round_up(v, m):
    return ((v + m - 1) // m) * m


def _chip_info():
    """(mxu_width, tensorcores_per_device, physical_vmem_bytes) — best effort."""
    kind = ""
    try:
        kind = (jax.devices()[0].device_kind or "").lower()
    except Exception:
        pass
    if "v7" in kind:
        return 256, 2, 64 << 20
    if "v6" in kind:
        return 256, 1, 128 << 20
    if "v5p" in kind:
        return 128, 2, 128 << 20
    if "v5" in kind:                       # v5e / "v5 lite"
        return 128, 1, 128 << 20
    if "v4" in kind:
        return 128, 2, 128 << 20
    return 128, 1, 64 << 20                # unknown: conservative defaults


def _kn_mod(S):
    """(k*n) mod S for k,n in [0,S) as exact int32, overflow-safe for S < ~4.2M."""
    k = jnp.arange(S, dtype=jnp.int32)
    if S <= 46340:                         # (S-1)^2 < 2^31: direct product is exact
        return (k[:, None] * k[None, :]) % S
    acc = jnp.zeros((S, S), jnp.int32)
    for shift in (24, 16, 8, 0):           # modular product, byte-by-byte
        byte = (k[None, :] >> shift) & 0xFF
        acc = (acc * 256 + k[:, None] * byte) % S
    return acc


def _prep(x, t, params_flat, n_layers, compute_dtype):
    """repeat-interleave, build the cosine matrix, pad/cast params.

    Returns (x_p, C, prepped_params, (B, S, D, Sp, Dp, Hp)).

    Zero padding is exact: padded feature/hidden channels stay identically zero
    through every layer, and padded sequence rows only multiply zero columns of
    C in the final IFFT, so slicing [:, :S, :D] recovers the unpadded result.
    """
    if x.shape[-2] != t.shape[-2]:
        if x.shape[-2] == 1:
            # repeat_interleave of a length-1 sequence == broadcast (no gather).
            x = jnp.broadcast_to(x, (x.shape[0], t.shape[-2], x.shape[-1]))
        else:
            x = jnp.repeat(x, t.shape[-2], axis=-2)

    B, S, D = x.shape
    H = params_flat[0].shape[1] if params_flat else D

    s_align = 32 // jnp.dtype(compute_dtype).itemsize     # 8 for f32, 16 for bf16
    Sp = _round_up(S, s_align)
    Dp = _round_up(D, 128)
    Hp = _round_up(H, 128)

    # Real-DFT cosine matrix; (k*n) mod S computed exactly in int32.
    c_core = jnp.cos((2.0 * jnp.pi / S) * _kn_mod(S).astype(jnp.float32))
    C = jnp.zeros((Sp, Sp), jnp.float32).at[:S, :S].set(c_core).astype(compute_dtype)
    # TODO(synk): for very large S (Sp >= ~2048 on v7x), tile the FFT/IFFT over
    # S with a reduction grid axis / generate C row-tiles in-kernel instead of
    # keeping the full SxS matrix resident in VMEM; also consider an f32 (or
    # bf16x2-split) C for tighter accuracy at large S.

    inv_s = 1.0 / float(S)
    prepped = []
    for i in range(n_layers):
        w1, b1, w2, b2 = params_flat[4 * i: 4 * i + 4]
        # Fold the IFFT 1/S scale into the last layer (removes an epilogue mul).
        scale = inv_s if i == n_layers - 1 else 1.0
        w1p = jnp.zeros((Dp, Hp), jnp.float32).at[:D, :H].set(w1.astype(jnp.float32))
        b1p = jnp.zeros((1, Hp), jnp.float32).at[:, :H].set(
            b1.astype(jnp.float32).reshape(1, H))
        w2p = jnp.zeros((Hp, Dp), jnp.float32).at[:H, :D].set(
            w2.astype(jnp.float32)) * scale
        b2p = jnp.zeros((1, Dp), jnp.float32).at[:, :D].set(
            b2.astype(jnp.float32).reshape(1, D)) * scale
        prepped += [w1p.astype(compute_dtype), b1p,       # weights in compute dtype
                    w2p.astype(compute_dtype), b2p]       # biases stay f32

    # x stored in the compute dtype -> halves the per-step HBM read of x.
    # TODO(synk): for very small D, pass x unpadded and zero-pad into a VMEM
    # scratch inside the kernel to avoid the Dp/D-inflated HBM copy.
    x_p = jnp.zeros((B, Sp, Dp), compute_dtype).at[:, :S, :D].set(
        x.astype(compute_dtype))
    return x_p, C, prepped, (B, S, D, Sp, Dp, Hp)


def _make_kernel(n_layers, bt, sp, dp, group, inv_s, compute_dtype, apply_inv_s):
    groups = [tuple(range(s, min(s + group, bt))) for s in range(0, bt, group)]

    def kernel(x_ref, c_ref, *rest):
        w_refs = rest[:4 * n_layers]
        out_ref = rest[4 * n_layers]
        f_ref = rest[4 * n_layers + 1]                      # (bt*sp, dp) f32 scratch

        C = c_ref[...]                                      # (sp, sp) compute dtype

        # --- real DFT: f[b] = C @ x[b].  `group` batch elements are lane-
        # concatenated so the MXU N-dim is >= the MXU width; results go
        # straight into the VMEM scratch (no concatenate along M).
        for grp in groups:
            if len(grp) == 1:
                xg = x_ref[grp[0]]
            else:
                xg = jnp.concatenate([x_ref[b] for b in grp], axis=-1)
            og = jnp.dot(C, xg, preferred_element_type=jnp.float32)
            for j, b in enumerate(grp):
                f_ref[pl.ds(b * sp, sp), :] = og[:, j * dp:(j + 1) * dp]

        # --- position-wise MLP stack on the flattened (bt*sp, dp) activations:
        # compute-dtype operands, f32 accumulation, biases added in f32.
        f = f_ref[...]
        for i in range(n_layers):
            w1 = w_refs[4 * i + 0][...]                     # (dp, hp) compute dtype
            b1 = w_refs[4 * i + 1][...]                     # (1, hp)  f32
            w2 = w_refs[4 * i + 2][...]                     # (hp, dp) compute dtype
            b2 = w_refs[4 * i + 3][...]                     # (1, dp)  f32
            h = jnp.dot(f.astype(compute_dtype), w1,
                        preferred_element_type=jnp.float32) + b1
            h = jnp.maximum(h, 0.0)
            f = jnp.dot(h.astype(compute_dtype), w2,
                        preferred_element_type=jnp.float32) + b2
        if n_layers:
            f_ref[...] = f                                  # keep live ranges short

        # --- real inverse DFT: out[b] = (1/S) * C @ f[b]; 1/S is folded into
        # the last layer's weights unless there are no layers.
        for grp in groups:
            if len(grp) == 1:
                fg = f_ref[pl.ds(grp[0] * sp, sp), :].astype(compute_dtype)
            else:
                fg = jnp.concatenate(
                    [f_ref[pl.ds(b * sp, sp), :].astype(compute_dtype)
                     for b in grp], axis=-1)
            og = jnp.dot(C, fg, preferred_element_type=jnp.float32)
            if apply_inv_s:
                og = og * inv_s
            for j, b in enumerate(grp):
                out_ref[b] = og[:, j * dp:(j + 1) * dp].astype(out_ref.dtype)

    return kernel


@functools.partial(jax.jit,
                   static_argnames=("n_layers", "compute_dtype", "single_buffer"))
def _fourier_flow_impl(x, t, params_flat, *, n_layers, compute_dtype, single_buffer):
    x_p, C, prepped, (B, S, D, Sp, Dp, Hp) = _prep(
        x, t, params_flat, n_layers, compute_dtype)
    out_dtype = x.dtype

    mxu_n, n_tc, vmem_phys = _chip_info()
    itemsize = lambda dt: jnp.dtype(dt).itemsize
    cd_sz = itemsize(compute_dtype)
    buf_inv = 1 if single_buffer else 2

    # ---- VMEM accounting (generation-aware) ----
    c_bytes = Sp * Sp * cd_sz
    param_bytes = sum(int(p.size) * itemsize(p.dtype) for p in prepped)
    fixed_bytes = buf_inv * (c_bytes + param_bytes)          # grid-invariant inputs
    per_bt = (2 * Sp * Dp * cd_sz                            # x block (double-buffered)
              + 2 * Sp * Dp * itemsize(out_dtype)            # out block (double-buffered)
              + Sp * Dp * 4                                  # f scratch
              + 2 * Sp * max(Dp, Hp) * 4)                    # live MLP intermediates
    gen_cap = int(vmem_phys * 3 // 4)                        # ~96 MiB (128 MiB parts) / ~48 MiB (v7x)
    budget = int(gen_cap * 0.7)

    # ---- batch tile: target ~512-1024 flattened MLP rows, keep >=2 parallel
    # grid steps only on multi-TensorCore chips, respect VMEM, bound unroll.
    bt_target = max(1, -(-768 // Sp))
    bt_tc = -(-B // n_tc) if (n_tc > 1 and B >= 2) else B
    bt_vmem = max(1, (budget - fixed_bytes) // per_bt)
    bt = int(max(1, min(bt_target, bt_tc, bt_vmem, 64, B)))
    nt = -(-B // bt)
    Bp = nt * bt
    if Bp != B:
        # TODO(synk): handle the ragged last batch tile in-kernel (pl.when /
        # partial blocks) instead of padding x in HBM.
        x_p = jnp.concatenate(
            [x_p, jnp.zeros((Bp - B, Sp, Dp), x_p.dtype)], axis=0)

    # Widen the FFT/IFFT matmul N-dim to the MXU width (256 on v6e/v7x, 128 on
    # v5e) by lane-concatenating `group` batch elements per dot.
    group = int(max(1, min(bt, mxu_n // Dp)))

    kernel = _make_kernel(n_layers, bt, Sp, Dp, group, 1.0 / float(S),
                          compute_dtype, apply_inv_s=(n_layers == 0))

    x_spec = pl.BlockSpec((bt, Sp, Dp), lambda i: (i, 0, 0))
    out_spec = pl.BlockSpec((bt, Sp, Dp), lambda i: (i, 0, 0))
    if single_buffer:
        # Grid-invariant inputs: single-buffer them (constant index_map, so
        # double-buffering buys nothing and wastes VMEM).
        inv_spec = lambda shape: pl.BlockSpec(shape, lambda i: (0, 0),
                                              pipeline_mode=pl.Buffered(1))
    else:
        inv_spec = lambda shape: pl.BlockSpec(shape, lambda i: (0, 0))
    c_spec = inv_spec((Sp, Sp))
    w_specs = [inv_spec(p.shape) for p in prepped]

    est = fixed_bytes + bt * per_bt
    vmem_limit = int(min(max(2 * est, 16 << 20), gen_cap))

    out = pl.pallas_call(
        kernel,
        out_shape=jax.ShapeDtypeStruct((Bp, Sp, Dp), out_dtype),
        grid_spec=pltpu.PrefetchScalarGridSpec(
            num_scalar_prefetch=0,
            grid=(nt,),
            in_specs=[x_spec, c_spec] + w_specs,
            out_specs=out_spec,
            scratch_shapes=[pltpu.VMEM((bt * Sp, Dp), jnp.float32)]),
        compiler_params=pltpu.CompilerParams(
            dimension_semantics=("parallel",),
            vmem_limit_bytes=vmem_limit),
    )(x_p, C, *prepped)

    return out[:B, :S, :D]


def fourier_flow_pallas(x, t, params_flat, *, n_layers, compute_dtype=jnp.bfloat16):
    """params_flat: tuple (W1_0, b1_0, W2_0, b2_0, W1_1, ...)."""
    try:
        out = _fourier_flow_impl(x, t, params_flat, n_layers=n_layers,
                                 compute_dtype=compute_dtype, single_buffer=True)
        return jax.block_until_ready(out)
    except Exception:
        # Fallback for Pallas builds that reject pipeline_mode=pl.Buffered(1):
        # identical kernel with default (double-buffered) invariant inputs.
        return _fourier_flow_impl(x, t, params_flat, n_layers=n_layers,
                                  compute_dtype=compute_dtype, single_buffer=False)


def fourier_flow_matched_ref(x, t, params_flat, *, n_layers,
                             compute_dtype=jnp.bfloat16):
    """Pure-JAX model with the kernel's exact numerics (compute-dtype-rounded
    operands, f32 accumulation) on the same padded arrays — tight mechanics check."""
    x_p, C, prepped, (B, S, D, Sp, Dp, Hp) = _prep(
        x, t, params_flat, n_layers, compute_dtype)
    rnd = lambda a: a.astype(compute_dtype).astype(jnp.float32)
    Cf = C.astype(jnp.float32)          # already rounded to compute_dtype in _prep
    f = jnp.einsum("ks,bsd->bkd", Cf, rnd(x_p))
    for i in range(n_layers):
        w1, b1, w2, b2 = prepped[4 * i: 4 * i + 4]
        h = jnp.maximum(
            jnp.einsum("bsd,dh->bsh", rnd(f), w1.astype(jnp.float32)) + b1, 0.0)
        f = jnp.einsum("bsh,hd->bsd", rnd(h), w2.astype(jnp.float32)) + b2
    out = jnp.einsum("ks,bsd->bkd", Cf, rnd(f))
    if n_layers == 0:
        out = out / S
    return out[:, :S, :D].astype(x.dtype)


def fourier_flow_reference(x, t, params_flat, n_layers):
    """Straight f32 port of the PyTorch forward (FFT-based) — semantic check."""
    if x.shape[-2] != t.shape[-2]:
        x = jnp.repeat(x, t.shape[-2], axis=-2)
    f = jnp.real(jnp.fft.fft(x.astype(jnp.complex64), axis=-2))
    for i in range(n_layers):
        w1, b1, w2, b2 = params_flat[4 * i: 4 * i + 4]
        f = jnp.maximum(f @ w1 + b1, 0.0) @ w2 + b2
    return jnp.real(jnp.fft.ifft(f.astype(jnp.complex64), axis=-2))


def init_params(key, dim, n_layers, hidden_dim):
    params = []
    for _ in range(n_layers):
        k1, k2, key = jax.random.split(key, 3)
        w1 = jax.random.uniform(k1, (dim, hidden_dim), jnp.float32,
                                minval=-1.0, maxval=1.0) / jnp.sqrt(dim)
        b1 = jnp.zeros((1, hidden_dim), jnp.float32)
        w2 = jax.random.uniform(k2, (hidden_dim, dim), jnp.float32,
                                minval=-1.0, maxval=1.0) / jnp.sqrt(hidden_dim)
        b2 = jnp.zeros((1, dim), jnp.float32)
        params += [w1, b1, w2, b2]
    return tuple(params)


if __name__ == "__main__":
    B, D, H, N_LAYERS = 2, 4, 32, 2
    S_T = 8  # number of time points (t's sequence length)

    key = jax.random.PRNGKey(0)
    kx, kt, kp = jax.random.split(key, 3)

    # x is an initial state with seq length 1 -> repeat_interleave'd to S_T
    x = jax.random.normal(kx, (B, 1, D), jnp.float32)
    t = jax.random.uniform(kt, (B, S_T, 1), jnp.float32)
    params = init_params(kp, D, N_LAYERS, H)

    out = fourier_flow_pallas(x, t, params, n_layers=N_LAYERS)
    out = jax.block_until_ready(out)
    assert out.shape == (B, S_T, D), out.shape

    # (1) tight check: same compute-dtype-operand / f32-accumulate numerics.
    ref_m = fourier_flow_matched_ref(x, t, params, n_layers=N_LAYERS)
    err_m = float(jnp.max(jnp.abs(out - ref_m)))
    assert err_m < 1e-2, f"matched-precision max abs err {err_m}"

    # (2) semantic check vs. the f32 FFT reference (bf16-appropriate tolerance).
    ref_f = fourier_flow_reference(x, t, params, N_LAYERS)
    rel = float(jnp.linalg.norm(out - ref_f) /
                (jnp.linalg.norm(ref_f) + 1e-12))
    assert rel < 5e-2, f"fft-reference relative err {rel}"

    print("KERNEL_OK")
</pallas_src>

<mosaic_0001>
module attributes {stable_mosaic.version = 11 : i64} {
  func.func @kernel(%arg0: i32, %arg1: memref<2x16x128xbf16, #tpu.memory_space<vmem>>, %arg2: memref<16x16xbf16, #tpu.memory_space<vmem>>, %arg3: memref<128x128xbf16, #tpu.memory_space<vmem>>, %arg4: memref<1x128xf32, #tpu.memory_space<vmem>>, %arg5: memref<128x128xbf16, #tpu.memory_space<vmem>>, %arg6: memref<1x128xf32, #tpu.memory_space<vmem>>, %arg7: memref<128x128xbf16, #tpu.memory_space<vmem>>, %arg8: memref<1x128xf32, #tpu.memory_space<vmem>>, %arg9: memref<128x128xbf16, #tpu.memory_space<vmem>>, %arg10: memref<1x128xf32, #tpu.memory_space<vmem>>, %arg11: memref<2x16x128xf32, #tpu.memory_space<vmem>>, %arg12: memref<32x128xf32, #tpu.memory_space<vmem>>) attributes {dimension_semantics = [#tpu.dimension_semantics<parallel>], iteration_bounds = array<i64: 1>, scalar_prefetch = 0 : i64, scratch_operands = 1 : i64, tpu.core_type = #tpu.core_type<tc>, window_params = [{transform_indices = @transform_0, window_bounds = array<i64: 2, 16, 128>}, {pipeline_mode = #tpu.pipeline_mode<synchronous>, transform_indices = @transform_1, window_bounds = array<i64: 16, 16>}, {pipeline_mode = #tpu.pipeline_mode<synchronous>, transform_indices = @transform_2, window_bounds = array<i64: 128, 128>}, {pipeline_mode = #tpu.pipeline_mode<synchronous>, transform_indices = @transform_3, window_bounds = array<i64: 1, 128>}, {pipeline_mode = #tpu.pipeline_mode<synchronous>, transform_indices = @transform_4, window_bounds = array<i64: 128, 128>}, {pipeline_mode = #tpu.pipeline_mode<synchronous>, transform_indices = @transform_5, window_bounds = array<i64: 1, 128>}, {pipeline_mode = #tpu.pipeline_mode<synchronous>, transform_indices = @transform_6, window_bounds = array<i64: 128, 128>}, {pipeline_mode = #tpu.pipeline_mode<synchronous>, transform_indices = @transform_7, window_bounds = array<i64: 1, 128>}, {pipeline_mode = #tpu.pipeline_mode<synchronous>, transform_indices = @transform_8, window_bounds = array<i64: 128, 128>}, {pipeline_mode = #tpu.pipeline_mode<synchronous>, transform_indices = @transform_9, window_bounds = array<i64: 1, 128>}, {transform_indices = @transform_10, window_bounds = array<i64: 2, 16, 128>}]} {
    %c0 = arith.constant 0 : index
    %c0_0 = arith.constant 0 : index
    %0 = vector.load %arg2[%c0, %c0_0] : memref<16x16xbf16, #tpu.memory_space<vmem>>, vector<16x16xbf16>
    %c0_1 = arith.constant 0 : index
    %c0_2 = arith.constant 0 : index
    %c0_3 = arith.constant 0 : index
    %1 = vector.load %arg1[%c0_1, %c0_2, %c0_3] : memref<2x16x128xbf16, #tpu.memory_space<vmem>>, vector<1x16x128xbf16>
    %2 = vector.shape_cast %1 : vector<1x16x128xbf16> to vector<16x128xbf16>
    %cst = arith.constant dense<0.000000e+00> : vector<16x128xf32>
    %3 = tpu.matmul %0, %2, %cst {dimension_numbers = #tpu.dot_dimension_numbers<[1], [0], [0], [1], [0, 0, 1, 1], [], []>} : vector<16x16xbf16>, vector<16x128xbf16>, vector<16x128xf32> -> vector<16x128xf32>
    %c0_4 = arith.constant 0 : index
    %c0_5 = arith.constant 0 : index
    %4 = vector.load %arg12[%c0_4, %c0_5] : memref<32x128xf32, #tpu.memory_space<vmem>>, vector<16x128xf32>
    tpu.vector_store %arg12[%c0_4, %c0_5], %3 {strides = array<i32>} : memref<32x128xf32, #tpu.memory_space<vmem>>, vector<16x128xf32>,
    %c1 = arith.constant 1 : index
    %c0_6 = arith.constant 0 : index
    %c0_7 = arith.constant 0 : index
    %5 = vector.load %arg1[%c1, %c0_6, %c0_7] : memref<2x16x128xbf16, #tpu.memory_space<vmem>>, vector<1x16x128xbf16>
    %6 = vector.shape_cast %5 : vector<1x16x128xbf16> to vector<16x128xbf16>
    %cst_8 = arith.constant dense<0.000000e+00> : vector<16x128xf32>
    %7 = tpu.matmul %0, %6, %cst_8 {dimension_numbers = #tpu.dot_dimension_numbers<[1], [0], [0], [1], [0, 0, 1, 1], [], []>} : vector<16x16xbf16>, vector<16x128xbf16>, vector<16x128xf32> -> vector<16x128xf32>
    %c16 = arith.constant 16 : index
    %c0_9 = arith.constant 0 : index
    %8 = vector.load %arg12[%c16, %c0_9] : memref<32x128xf32, #tpu.memory_space<vmem>>, vector<16x128xf32>
    tpu.vector_store %arg12[%c16, %c0_9], %7 {strides = array<i32>} : memref<32x128xf32, #tpu.memory_space<vmem>>, vector<16x128xf32>,
    %c0_10 = arith.constant 0 : index
    %c0_11 = arith.constant 0 : index
    %9 = vector.load %arg12[%c0_10, %c0_11] : memref<32x128xf32, #tpu.memory_space<vmem>>, vector<32x128xf32>
    %c0_12 = arith.constant 0 : index
    %c0_13 = arith.constant 0 : index
    %10 = vector.load %arg3[%c0_12, %c0_13] : memref<128x128xbf16, #tpu.memory_space<vmem>>, vector<128x128xbf16>
    %c0_14 = arith.constant 0 : index
    %c0_15 = arith.constant 0 : index
    %11 = vector.load %arg4[%c0_14, %c0_15] : memref<1x128xf32, #tpu.memory_space<vmem>>, vector<1x128xf32>
    %c0_16 = arith.constant 0 : index
    %c0_17 = arith.constant 0 : index
    %12 = vector.load %arg5[%c0_16, %c0_17] : memref<128x128xbf16, #tpu.memory_space<vmem>>, vector<128x128xbf16>
    %c0_18 = arith.constant 0 : index
    %c0_19 = arith.constant 0 : index
    %13 = vector.load %arg6[%c0_18, %c0_19] : memref<1x128xf32, #tpu.memory_space<vmem>>, vector<1x128xf32>
    %14 = arith.truncf %9 : vector<32x128xf32> to vector<32x128xbf16>
    %cst_20 = arith.constant dense<0.000000e+00> : vector<32x128xf32>
    %15 = tpu.matmul %14, %10, %cst_20 {dimension_numbers = #tpu.dot_dimension_numbers<[1], [0], [0], [1], [0, 0, 1, 1], [], []>} : vector<32x128xbf16>, vector<128x128xbf16>, vector<32x128xf32> -> vector<32x128xf32>
    %16 = vector.broadcast %11 : vector<1x128xf32> to vector<32x128xf32>
    %17 = arith.addf %15, %16 : vector<32x128xf32>
    %cst_21 = arith.constant 0.000000e+00 : f32
    %18 = vector.broadcast %cst_21 : f32 to vector<32x128xf32>
    %19 = arith.maximumf %17, %18 : vector<32x128xf32>
    %20 = arith.truncf %19 : vector<32x128xf32> to vector<32x128xbf16>
    %cst_22 = arith.constant dense<0.000000e+00> : vector<32x128xf32>
    %21 = tpu.matmul %20, %12, %cst_22 {dimension_numbers = #tpu.dot_dimension_numbers<[1], [0], [0], [1], [0, 0, 1, 1], [], []>} : vector<32x128xbf16>, vector<128x128xbf16>, vector<32x128xf32> -> vector<32x128xf32>
    %22 = vector.broadcast %13 : vector<1x128xf32> to vector<32x128xf32>
    %23 = arith.addf %21, %22 : vector<32x128xf32>
    %c0_23 = arith.constant 0 : index
    %c0_24 = arith.constant 0 : index
    %24 = vector.load %arg7[%c0_23, %c0_24] : memref<128x128xbf16, #tpu.memory_space<vmem>>, vector<128x128xbf16>
    %c0_25 = arith.constant 0 : index
    %c0_26 = arith.constant 0 : index
    %25 = vector.load %arg8[%c0_25, %c0_26] : memref<1x128xf32, #tpu.memory_space<vmem>>, vector<1x128xf32>
    %c0_27 = arith.constant 0 : index
    %c0_28 = arith.constant 0 : index
    %26 = vector.load %arg9[%c0_27, %c0_28] : memref<128x128xbf16, #tpu.memory_space<vmem>>, vector<128x128xbf16>
    %c0_29 = arith.constant 0 : index
    %c0_30 = arith.constant 0 : index
    %27 = vector.load %arg10[%c0_29, %c0_30] : memref<1x128xf32, #tpu.memory_space<vmem>>, vector<1x128xf32>
    %28 = arith.truncf %23 : vector<32x128xf32> to vector<32x128xbf16>
    %cst_31 = arith.constant dense<0.000000e+00> : vector<32x128xf32>
    %29 = tpu.matmul %28, %24, %cst_31 {dimension_numbers = #tpu.dot_dimension_numbers<[1], [0], [0], [1], [0, 0, 1, 1], [], []>} : vector<32x128xbf16>, vector<128x128xbf16>, vector<32x128xf32> -> vector<32x128xf32>
    %30 = vector.broadcast %25 : vector<1x128xf32> to vector<32x128xf32>
    %31 = arith.addf %29, %30 : vector<32x128xf32>
    %cst_32 = arith.constant 0.000000e+00 : f32
    %32 = vector.broadcast %cst_32 : f32 to vector<32x128xf32>
    %33 = arith.maximumf %31, %32 : vector<32x128xf32>
    %34 = arith.truncf %33 : vector<32x128xf32> to vector<32x128xbf16>
    %cst_33 = arith.constant dense<0.000000e+00> : vector<32x128xf32>
    %35 = tpu.matmul %34, %26, %cst_33 {dimension_numbers = #tpu.dot_dimension_numbers<[1], [0], [0], [1], [0, 0, 1, 1], [], []>} : vector<32x128xbf16>, vector<128x128xbf16>, vector<32x128xf32> -> vector<32x128xf32>
    %36 = vector.broadcast %27 : vector<1x128xf32> to vector<32x128xf32>
    %37 = arith.addf %35, %36 : vector<32x128xf32>
    %c0_34 = arith.constant 0 : index
    %c0_35 = arith.constant 0 : index
    %38 = vector.load %arg12[%c0_34, %c0_35] : memref<32x128xf32, #tpu.memory_space<vmem>>, vector<32x128xf32>
    tpu.vector_store %arg12[%c0_34, %c0_35], %37 {strides = array<i32>} : memref<32x128xf32, #tpu.memory_space<vmem>>, vector<32x128xf32>,
    %c0_36 = arith.constant 0 : index
    %c0_37 = arith.constant 0 : index
    %39 = vector.load %arg12[%c0_36, %c0_37] : memref<32x128xf32, #tpu.memory_space<vmem>>, vector<16x128xf32>
    %40 = arith.truncf %39 : vector<16x128xf32> to vector<16x128xbf16>
    %cst_38 = arith.constant dense<0.000000e+00> : vector<16x128xf32>
    %41 = tpu.matmul %0, %40, %cst_38 {dimension_numbers = #tpu.dot_dimension_numbers<[1], [0], [0], [1], [0, 0, 1, 1], [], []>} : vector<16x16xbf16>, vector<16x128xbf16>, vector<16x128xf32> -> vector<16x128xf32>
    %c0_39 = arith.constant 0 : index
    %c0_40 = arith.constant 0 : index
    %c0_41 = arith.constant 0 : index
    %42 = vector.load %arg11[%c0_39, %c0_40, %c0_41] : memref<2x16x128xf32, #tpu.memory_space<vmem>>, vector<1x16x128xf32>
    %43 = vector.shape_cast %42 : vector<1x16x128xf32> to vector<16x128xf32>
    %44 = vector.shape_cast %41 : vector<16x128xf32> to vector<1x16x128xf32>
    tpu.vector_store %arg11[%c0_39, %c0_40, %c0_41], %44 {strides = array<i32>} : memref<2x16x128xf32, #tpu.memory_space<vmem>>, vector<1x16x128xf32>,
    %c16_42 = arith.constant 16 : index
    %c0_43 = arith.constant 0 : index
    %45 = vector.load %arg12[%c16_42, %c0_43] : memref<32x128xf32, #tpu.memory_space<vmem>>, vector<16x128xf32>
    %46 = arith.truncf %45 : vector<16x128xf32> to vector<16x128xbf16>
    %cst_44 = arith.constant dense<0.000000e+00> : vector<16x128xf32>
    %47 = tpu.matmul %0, %46, %cst_44 {dimension_numbers = #tpu.dot_dimension_numbers<[1], [0], [0], [1], [0, 0, 1, 1], [], []>} : vector<16x16xbf16>, vector<16x128xbf16>, vector<16x128xf32> -> vector<16x128xf32>
    %c1_45 = arith.constant 1 : index
    %c0_46 = arith.constant 0 : index
    %c0_47 = arith.constant 0 : index
    %48 = vector.load %arg11[%c1_45, %c0_46, %c0_47] : memref<2x16x128xf32, #tpu.memory_space<vmem>>, vector<1x16x128xf32>
    %49 = vector.shape_cast %48 : vector<1x16x128xf32> to vector<16x128xf32>
    %50 = vector.shape_cast %47 : vector<16x128xf32> to vector<1x16x128xf32>
    tpu.vector_store %arg11[%c1_45, %c0_46, %c0_47], %50 {strides = array<i32>} : memref<2x16x128xf32, #tpu.memory_space<vmem>>, vector<1x16x128xf32>,
    return
  }
  func.func @transform_0(%arg0: i32) -> (i32, i32, i32) {
    %c0_i32 = arith.constant 0 : i32
    %c0_i32_0 = arith.constant 0 : i32
    %c0_i32_1 = arith.constant 0 : i32
    return %arg0, %c0_i32, %c0_i32_0 : i32, i32, i32
  }
  func.func @transform_1(%arg0: i32) -> (i32, i32) {
    %c0_i32 = arith.constant 0 : i32
    %c0_i32_0 = arith.constant 0 : i32
    %c0_i32_1 = arith.constant 0 : i32
    return %c0_i32, %c0_i32_0 : i32, i32
  }
  func.func @transform_2(%arg0: i32) -> (i32, i32) {
    %c0_i32 = arith.constant 0 : i32
    %c0_i32_0 = arith.constant 0 : i32
    %c0_i32_1 = arith.constant 0 : i32
    return %c0_i32, %c0_i32_0 : i32, i32
  }
  func.func @transform_3(%arg0: i32) -> (i32, i32) {
    %c0_i32 = arith.constant 0 : i32
    %c0_i32_0 = arith.constant 0 : i32
    %c0_i32_1 = arith.constant 0 : i32
    return %c0_i32, %c0_i32_0 : i32, i32
  }
  func.func @transform_4(%arg0: i32) -> (i32, i32) {
    %c0_i32 = arith.constant 0 : i32
    %c0_i32_0 = arith.constant 0 : i32
    %c0_i32_1 = arith.constant 0 : i32
    return %c0_i32, %c0_i32_0 : i32, i32
  }
  func.func @transform_5(%arg0: i32) -> (i32, i32) {
    %c0_i32 = arith.constant 0 : i32
    %c0_i32_0 = arith.constant 0 : i32
    %c0_i32_1 = arith.constant 0 : i32
    return %c0_i32, %c0_i32_0 : i32, i32
  }
  func.func @transform_6(%arg0: i32) -> (i32, i32) {
    %c0_i32 = arith.constant 0 : i32
    %c0_i32_0 = arith.constant 0 : i32
    %c0_i32_1 = arith.constant 0 : i32
    return %c0_i32, %c0_i32_0 : i32, i32
  }
  func.func @transform_7(%arg0: i32) -> (i32, i32) {
    %c0_i32 = arith.constant 0 : i32
    %c0_i32_0 = arith.constant 0 : i32
    %c0_i32_1 = arith.constant 0 : i32
    return %c0_i32, %c0_i32_0 : i32, i32
  }
  func.func @transform_8(%arg0: i32) -> (i32, i32) {
    %c0_i32 = arith.constant 0 : i32
    %c0_i32_0 = arith.constant 0 : i32
    %c0_i32_1 = arith.constant 0 : i32
    return %c0_i32, %c0_i32_0 : i32, i32
  }
  func.func @transform_9(%arg0: i32) -> (i32, i32) {
    %c0_i32 = arith.constant 0 : i32
    %c0_i32_0 = arith.constant 0 : i32
    %c0_i32_1 = arith.constant 0 : i32
    return %c0_i32, %c0_i32_0 : i32, i32
  }
  func.func @transform_10(%arg0: i32) -> (i32, i32, i32) {
    %c0_i32 = arith.constant 0 : i32
    %c0_i32_0 = arith.constant 0 : i32
    %c0_i32_1 = arith.constant 0 : i32
    return %arg0, %c0_i32, %c0_i32_0 : i32, i32, i32
  }
}

module attributes {stable_mosaic.version = 11 : i64} {
  func.func @kernel(%arg0: i32, %arg1: memref<2x16x128xbf16, #tpu.memory_space<vmem>>, %arg2: memref<16x16xbf16, #tpu.memory_space<vmem>>, %arg3: memref<128x128xbf16, #tpu.memory_space<vmem>>, %arg4: memref<1x128xf32, #tpu.memory_space<vmem>>, %arg5: memref<128x128xbf16, #tpu.memory_space<vmem>>, %arg6: memref<1x128xf32, #tpu.memory_space<vmem>>, %arg7: memref<128x128xbf16, #tpu.memory_space<vmem>>, %arg8: memref<1x128xf32, #tpu.memory_space<vmem>>, %arg9: memref<128x128xbf16, #tpu.memory_space<vmem>>, %arg10: memref<1x128xf32, #tpu.memory_space<vmem>>, %arg11: memref<2x16x128xf32, #tpu.memory_space<vmem>>, %arg12: memref<32x128xf32, #tpu.memory_space<vmem>>) attributes {dimension_semantics = [#tpu.dimension_semantics<parallel>], iteration_bounds = array<i64: 1>, scalar_prefetch = 0 : i64, scratch_operands = 1 : i64, tpu.core_type = #tpu.core_type<tc>, window_params = [{transform_indices = @transform_0, window_bounds = array<i64: 2, 16, 128>}, {pipeline_mode = #tpu.pipeline_mode<synchronous>, transform_indices = @transform_1, window_bounds = array<i64: 16, 16>}, {pipeline_mode = #tpu.pipeline_mode<synchronous>, transform_indices = @transform_2, window_bounds = array<i64: 128, 128>}, {pipeline_mode = #tpu.pipeline_mode<synchronous>, transform_indices = @transform_3, window_bounds = array<i64: 1, 128>}, {pipeline_mode = #tpu.pipeline_mode<synchronous>, transform_indices = @transform_4, window_bounds = array<i64: 128, 128>}, {pipeline_mode = #tpu.pipeline_mode<synchronous>, transform_indices = @transform_5, window_bounds = array<i64: 1, 128>}, {pipeline_mode = #tpu.pipeline_mode<synchronous>, transform_indices = @transform_6, window_bounds = array<i64: 128, 128>}, {pipeline_mode = #tpu.pipeline_mode<synchronous>, transform_indices = @transform_7, window_bounds = array<i64: 1, 128>}, {pipeline_mode = #tpu.pipeline_mode<synchronous>, transform_indices = @transform_8, window_bounds = array<i64: 128, 128>}, {pipeline_mode = #tpu.pipeline_mode<synchronous>, transform_indices = @transform_9, window_bounds = array<i64: 1, 128>}, {transform_indices = @transform_10, window_bounds = array<i64: 2, 16, 128>}]} {
    %c0 = arith.constant 0 : index
    %c0_0 = arith.constant 0 : index
    %0 = vector.load %arg2[%c0, %c0_0] : memref<16x16xbf16, #tpu.memory_space<vmem>>, vector<16x16xbf16>
    %c0_1 = arith.constant 0 : index
    %c0_2 = arith.constant 0 : index
    %c0_3 = arith.constant 0 : index
    %1 = vector.load %arg1[%c0_1, %c0_2, %c0_3] : memref<2x16x128xbf16, #tpu.memory_space<vmem>>, vector<1x16x128xbf16>
    %2 = vector.shape_cast %1 : vector<1x16x128xbf16> to vector<16x128xbf16>
    %cst = arith.constant dense<0.000000e+00> : vector<16x128xf32>
    %3 = tpu.matmul %0, %2, %cst {dimension_numbers = #tpu.dot_dimension_numbers<[1], [0], [0], [1], [0, 0, 1, 1], [], []>} : vector<16x16xbf16>, vector<16x128xbf16>, vector<16x128xf32> -> vector<16x128xf32>
    %c0_4 = arith.constant 0 : index
    %c0_5 = arith.constant 0 : index
    %4 = vector.load %arg12[%c0_4, %c0_5] : memref<32x128xf32, #tpu.memory_space<vmem>>, vector<16x128xf32>
    tpu.vector_store %arg12[%c0_4, %c0_5], %3 {strides = array<i32>} : memref<32x128xf32, #tpu.memory_space<vmem>>, vector<16x128xf32>,
    %c1 = arith.constant 1 : index
    %c0_6 = arith.constant 0 : index
    %c0_7 = arith.constant 0 : index
    %5 = vector.load %arg1[%c1, %c0_6, %c0_7] : memref<2x16x128xbf16, #tpu.memory_space<vmem>>, vector<1x16x128xbf16>
    %6 = vector.shape_cast %5 : vector<1x16x128xbf16> to vector<16x128xbf16>
    %cst_8 = arith.constant dense<0.000000e+00> : vector<16x128xf32>
    %7 = tpu.matmul %0, %6, %cst_8 {dimension_numbers = #tpu.dot_dimension_numbers<[1], [0], [0], [1], [0, 0, 1, 1], [], []>} : vector<16x16xbf16>, vector<16x128xbf16>, vector<16x128xf32> -> vector<16x128xf32>
    %c16 = arith.constant 16 : index
    %c0_9 = arith.constant 0 : index
    %8 = vector.load %arg12[%c16, %c0_9] : memref<32x128xf32, #tpu.memory_space<vmem>>, vector<16x128xf32>
    tpu.vector_store %arg12[%c16, %c0_9], %7 {strides = array<i32>} : memref<32x128xf32, #tpu.memory_space<vmem>>, vector<16x128xf32>,
    %c0_10 = arith.constant 0 : index
    %c0_11 = arith.constant 0 : index
    %9 = vector.load %arg12[%c0_10, %c0_11] : memref<32x128xf32, #tpu.memory_space<vmem>>, vector<32x128xf32>
    %c0_12 = arith.constant 0 : index
    %c0_13 = arith.constant 0 : index
    %10 = vector.load %arg3[%c0_12, %c0_13] : memref<128x128xbf16, #tpu.memory_space<vmem>>, vector<128x128xbf16>
    %c0_14 = arith.constant 0 : index
    %c0_15 = arith.constant 0 : index
    %11 = vector.load %arg4[%c0_14, %c0_15] : memref<1x128xf32, #tpu.memory_space<vmem>>, vector<1x128xf32>
    %c0_16 = arith.constant 0 : index
    %c0_17 = arith.constant 0 : index
    %12 = vector.load %arg5[%c0_16, %c0_17] : memref<128x128xbf16, #tpu.memory_space<vmem>>, vector<128x128xbf16>
    %c0_18 = arith.constant 0 : index
    %c0_19 = arith.constant 0 : index
    %13 = vector.load %arg6[%c0_18, %c0_19] : memref<1x128xf32, #tpu.memory_space<vmem>>, vector<1x128xf32>
    %14 = arith.truncf %9 : vector<32x128xf32> to vector<32x128xbf16>
    %cst_20 = arith.constant dense<0.000000e+00> : vector<32x128xf32>
    %15 = tpu.matmul %14, %10, %cst_20 {dimension_numbers = #tpu.dot_dimension_numbers<[1], [0], [0], [1], [0, 0, 1, 1], [], []>} : vector<32x128xbf16>, vector<128x128xbf16>, vector<32x128xf32> -> vector<32x128xf32>
    %16 = vector.broadcast %11 : vector<1x128xf32> to vector<32x128xf32>
    %17 = arith.addf %15, %16 : vector<32x128xf32>
    %cst_21 = arith.constant 0.000000e+00 : f32
    %18 = vector.broadcast %cst_21 : f32 to vector<32x128xf32>
    %19 = arith.maximumf %17, %18 : vector<32x128xf32>
    %20 = arith.truncf %19 : vector<32x128xf32> to vector<32x128xbf16>
    %cst_22 = arith.constant dense<0.000000e+00> : vector<32x128xf32>
    %21 = tpu.matmul %20, %12, %cst_22 {dimension_numbers = #tpu.dot_dimension_numbers<[1], [0], [0], [1], [0, 0, 1, 1], [], []>} : vector<32x128xbf16>, vector<128x128xbf16>, vector<32x128xf32> -> vector<32x128xf32>
    %22 = vector.broadcast %13 : vector<1x128xf32> to vector<32x128xf32>
    %23 = arith.addf %21, %22 : vector<32x128xf32>
    %c0_23 = arith.constant 0 : index
    %c0_24 = arith.constant 0 : index
    %24 = vector.load %arg7[%c0_23, %c0_24] : memref<128x128xbf16, #tpu.memory_space<vmem>>, vector<128x128xbf16>
    %c0_25 = arith.constant 0 : index
    %c0_26 = arith.constant 0 : index
    %25 = vector.load %arg8[%c0_25, %c0_26] : memref<1x128xf32, #tpu.memory_space<vmem>>, vector<1x128xf32>
    %c0_27 = arith.constant 0 : index
    %c0_28 = arith.constant 0 : index
    %26 = vector.load %arg9[%c0_27, %c0_28] : memref<128x128xbf16, #tpu.memory_space<vmem>>, vector<128x128xbf16>
    %c0_29 = arith.constant 0 : index
    %c0_30 = arith.constant 0 : index
    %27 = vector.load %arg10[%c0_29, %c0_30] : memref<1x128xf32, #tpu.memory_space<vmem>>, vector<1x128xf32>
    %28 = arith.truncf %23 : vector<32x128xf32> to vector<32x128xbf16>
    %cst_31 = arith.constant dense<0.000000e+00> : vector<32x128xf32>
    %29 = tpu.matmul %28, %24, %cst_31 {dimension_numbers = #tpu.dot_dimension_numbers<[1], [0], [0], [1], [0, 0, 1, 1], [], []>} : vector<32x128xbf16>, vector<128x128xbf16>, vector<32x128xf32> -> vector<32x128xf32>
    %30 = vector.broadcast %25 : vector<1x128xf32> to vector<32x128xf32>
    %31 = arith.addf %29, %30 : vector<32x128xf32>
    %cst_32 = arith.constant 0.000000e+00 : f32
    %32 = vector.broadcast %cst_32 : f32 to vector<32x128xf32>
    %33 = arith.maximumf %31, %32 : vector<32x128xf32>
    %34 = arith.truncf %33 : vector<32x128xf32> to vector<32x128xbf16>
    %cst_33 = arith.constant dense<0.000000e+00> : vector<32x128xf32>
    %35 = tpu.matmul %34, %26, %cst_33 {dimension_numbers = #tpu.dot_dimension_numbers<[1], [0], [0], [1], [0, 0, 1, 1], [], []>} : vector<32x128xbf16>, vector<128x128xbf16>, vector<32x128xf32> -> vector<32x128xf32>
    %36 = vector.broadcast %27 : vector<1x128xf32> to vector<32x128xf32>
    %37 = arith.addf %35, %36 : vector<32x128xf32>
    %c0_34 = arith.constant 0 : index
    %c0_35 = arith.constant 0 : index
    %38 = vector.load %arg12[%c0_34, %c0_35] : memref<32x128xf32, #tpu.memory_space<vmem>>, vector<32x128xf32>
    tpu.vector_store %arg12[%c0_34, %c0_35], %37 {strides = array<i32>} : memref<32x128xf32, #tpu.memory_space<vmem>>, vector<32x128xf32>,
    %c0_36 = arith.constant 0 : index
    %c0_37 = arith.constant 0 : index
    %39 = vector.load %arg12[%c0_36, %c0_37] : memref<32x128xf32, #tpu.memory_space<vmem>>, vector<16x128xf32>
    %40 = arith.truncf %39 : vector<16x128xf32> to vector<16x128xbf16>
    %cst_38 = arith.constant dense<0.000000e+00> : vector<16x128xf32>
    %41 = tpu.matmul %0, %40, %cst_38 {dimension_numbers = #tpu.dot_dimension_numbers<[1], [0], [0], [1], [0, 0, 1, 1], [], []>} : vector<16x16xbf16>, vector<16x128xbf16>, vector<16x128xf32> -> vector<16x128xf32>
    %c0_39 = arith.constant 0 : index
    %c0_40 = arith.constant 0 : index
    %c0_41 = arith.constant 0 : index
    %42 = vector.load %arg11[%c0_39, %c0_40, %c0_41] : memref<2x16x128xf32, #tpu.memory_space<vmem>>, vector<1x16x128xf32>
    %43 = vector.shape_cast %42 : vector<1x16x128xf32> to vector<16x128xf32>
    %44 = vector.shape_cast %41 : vector<16x128xf32> to vector<1x16x128xf32>
    tpu.vector_store %arg11[%c0_39, %c0_40, %c0_41], %44 {strides = array<i32>} : memref<2x16x128xf32, #tpu.memory_space<vmem>>, vector<1x16x128xf32>,
    %c16_42 = arith.constant 16 : index
    %c0_43 = arith.constant 0 : index
    %45 = vector.load %arg12[%c16_42, %c0_43] : memref<32x128xf32, #tpu.memory_space<vmem>>, vector<16x128xf32>
    %46 = arith.truncf %45 : vector<16x128xf32> to vector<16x128xbf16>
    %cst_44 = arith.constant dense<0.000000e+00> : vector<16x128xf32>
    %47 = tpu.matmul %0, %46, %cst_44 {dimension_numbers = #tpu.dot_dimension_numbers<[1], [0], [0], [1], [0, 0, 1, 1], [], []>} : vector<16x16xbf16>, vector<16x128xbf16>, vector<16x128xf32> -> vector<16x128xf32>
    %c1_45 = arith.constant 1 : index
    %c0_46 = arith.constant 0 : index
    %c0_47 = arith.constant 0 : index
    %48 = vector.load %arg11[%c1_45, %c0_46, %c0_47] : memref<2x16x128xf32, #tpu.memory_space<vmem>>, vector<1x16x128xf32>
    %49 = vector.shape_cast %48 : vector<1x16x128xf32> to vector<16x128xf32>
    %50 = vector.shape_cast %47 : vector<16x128xf32> to vector<1x16x128xf32>
    tpu.vector_store %arg11[%c1_45, %c0_46, %c0_47], %50 {strides = array<i32>} : memref<2x16x128xf32, #tpu.memory_space<vmem>>, vector<1x16x128xf32>,
    return
  }
  func.func @transform_0(%arg0: i32) -> (i32, i32, i32) {
    %c0_i32 = arith.constant 0 : i32
    %c0_i32_0 = arith.constant 0 : i32
    %c0_i32_1 = arith.constant 0 : i32
    return %arg0, %c0_i32, %c0_i32_0 : i32, i32, i32
  }
  func.func @transform_1(%arg0: i32) -> (i32, i32) {
    %c0_i32 = arith.constant 0 : i32
    %c0_i32_0 = arith.constant 0 : i32
    %c0_i32_1 = arith.constant 0 : i32
    return %c0_i32, %c0_i32_0 : i32, i32
  }
  func.func @transform_2(%arg0: i32) -> (i32, i32) {
    %c0_i32 = arith.constant 0 : i32
    %c0_i32_0 = arith.constant 0 : i32
    %c0_i32_1 = arith.constant 0 : i32
    return %c0_i32, %c0_i32_0 : i32, i32
  }
  func.func @transform_3(%arg0: i32) -> (i32, i32) {
    %c0_i32 = arith.constant 0 : i32
    %c0_i32_0 = arith.constant 0 : i32
    %c0_i32_1 = arith.constant 0 : i32
    return %c0_i32, %c0_i32_0 : i32, i32
  }
  func.func @transform_4(%arg0: i32) -> (i32, i32) {
    %c0_i32 = arith.constant 0 : i32
    %c0_i32_0 = arith.constant 0 : i32
    %c0_i32_1 = arith.constant 0 : i32
    return %c0_i32, %c0_i32_0 : i32, i32
  }
  func.func @transform_5(%arg0: i32) -> (i32, i32) {
    %c0_i32 = arith.constant 0 : i32
    %c0_i32_0 = arith.constant 0 : i32
    %c0_i32_1 = arith.constant 0 : i32
    return %c0_i32, %c0_i32_0 : i32, i32
  }
  func.func @transform_6(%arg0: i32) -> (i32, i32) {
    %c0_i32 = arith.constant 0 : i32
    %c0_i32_0 = arith.constant 0 : i32
    %c0_i32_1 = arith.constant 0 : i32
    return %c0_i32, %c0_i32_0 : i32, i32
  }
  func.func @transform_7(%arg0: i32) -> (i32, i32) {
    %c0_i32 = arith.constant 0 : i32
    %c0_i32_0 = arith.constant 0 : i32
    %c0_i32_1 = arith.constant 0 : i32
    return %c0_i32, %c0_i32_0 : i32, i32
  }
  func.func @transform_8(%arg0: i32) -> (i32, i32) {
    %c0_i32 = arith.constant 0 : i32
    %c0_i32_0 = arith.constant 0 : i32
    %c0_i32_1 = arith.constant 0 : i32
    return %c0_i32, %c0_i32_0 : i32, i32
  }
  func.func @transform_9(%arg0: i32) -> (i32, i32) {
    %c0_i32 = arith.constant 0 : i32
    %c0_i32_0 = arith.constant 0 : i32
    %c0_i32_1 = arith.constant 0 : i32
    return %c0_i32, %c0_i32_0 : i32, i32
  }
  func.func @transform_10(%arg0: i32) -> (i32, i32, i32) {
    %c0_i32 = arith.constant 0 : i32
    %c0_i32_0 = arith.constant 0 : i32
    %c0_i32_1 = arith.constant 0 : i32
    return %arg0, %c0_i32, %c0_i32_0 : i32, i32, i32
  }
}

</mosaic_0001>

<bundles_post_ra>
// kernel: _fourier_flow_impl.1
= control target key start
LH: loop header
LB: loop body
LE: loop exit
PB: predicated region body
PF: predicated region fallthrough
CT: control target
= control target key end

     0   :  { %v987_v0 = vmov 0.0   ;;  %vm988_vm0 = vmmov 0   ;;  %vm51_vm1 = vcmask 130048   ;;  %s1195_s0 = inlined_call_operand.vmem [shape: bf16[2,16,128], index: 0, kind: input, shape index: {}]   ;;  %s1196_s1 = inlined_call_operand.vmem [shape: bf16[16,16], index: 1, kind: input, shape index: {}]   ;;  %s1197_s2 = inlined_call_operand.vmem [shape: bf16[128,128], index: 2, kind: input, shape index: {}]   ;;  %s1198_s4 = inlined_call_operand.vmem [shape: bf16[128,128], index: 4, kind: input, shape index: {}]   ;;  %s1199_s6 = inlined_call_operand.vmem [shape: bf16[128,128], index: 6, kind: input, shape index: {}]   ;;  %s1200_s3 = inlined_call_operand.vmem [shape: f32[1,128], index: 3, kind: input, shape index: {}]   ;;  %s1201_s8 = inlined_call_operand.vmem [shape: bf16[128,128], index: 8, kind: input, shape index: {}]   ;;  %s1202_s5 = inlined_call_operand.vmem [shape: f32[1,128], index: 5, kind: input, shape index: {}]   ;;  %s1203_s7 = inlined_call_operand.vmem [shape: f32[1,128], index: 7, kind: input, shape index: {}]   ;;  %s1204_s9 = inlined_call_operand.vmem [shape: f32[1,128], index: 9, kind: input, shape index: {}]   ;;  %s1205_s10 = inlined_call_operand.vmem [shape: f32[2,16,128], index: 10, kind: output, shape index: {}]  }
   0x1   :  { %846 = vmatprep.subr.bf16.mxu0 %v987_v0  ;;  %852 = vmatprep.subr.bf16.mxu1 %v987_v0  ;;  %v952_v1 = vld [vmem:[%s1195_s0] sm:$0xff]   ;;  %v953_v2 = vld [vmem:[%s1195_s0 + $0x8] sm:$0xff]   ;;  %v957_v6 = vld [vmem:[%s1197_s2 + $0x10] sm:$0xff]  }
   0x2   :  { %848 = vmatprep.mubr.msk.bf16.mxu0 %vm988_vm0, %v987_v0  ;;  %854 = vmatprep.mubr.msk.bf16.mxu1 %vm988_vm0, %v987_v0  ;;  %v1059_v3 = vld [vmem:[%s1196_s1] sm:$0xff]   ;;  %v956_v5 = vld [vmem:[%s1197_s2 + $0x8] sm:$0xff]   ;;  %v958_v7 = vld [vmem:[%s1197_s2 + $0x18] sm:$0xff]  }
   0x3   :  { %847 = vmatpush3.bf16.msra.mxu0 %v952_v1  ;;  %853 = vmatpush3.bf16.msra.mxu1 %v953_v2  ;;  %v955_v4 = vld [vmem:[%s1197_s2] sm:$0xff]   ;;  %v960_v9 = vld [vmem:[%s1197_s2 + $0x28] sm:$0xff]   ;;  %v961_v10 = vld [vmem:[%s1197_s2 + $0x30] sm:$0xff]  }
   0x4   :  { %858 = vmatprep.subr.bf16.mxu0 %v955_v4  ;;  %v959_v8 = vld [vmem:[%s1197_s2 + $0x20] sm:$0xff]   ;;  %v962_v11 = vld [vmem:[%s1197_s2 + $0x38] sm:$0xff]   ;;  %v964_v13 = vld [vmem:[%s1198_s4 + $0x8] sm:$0xff]  }
   0x5   :  { %v963_v12 = vld [vmem:[%s1198_s4] sm:$0xff]   ;;  %v965_v14 = vld [vmem:[%s1198_s4 + $0x10] sm:$0xff]   ;;  %v966_v15 = vld [vmem:[%s1198_s4 + $0x18] sm:$0xff]  }
   0x6   :  { %849 = vmatmul.mubr.msk.bf16.vlgmr.msra.gmra.mrb[0].mxu0 %vm51_vm1, %v1059_v3  ;;  %855 = vmatmul.mubr.msk.bf16.vlgmr.msra.gmra.mrb[0].mxu1 %vm51_vm1, %v1059_v3  ;;  %v967_v16 = vld [vmem:[%s1198_s4 + $0x20] sm:$0xff]   ;;  %v968_v17 = vld [vmem:[%s1198_s4 + $0x28] sm:$0xff]   ;;  %v969_v28 = vld [vmem:[%s1198_s4 + $0x30] sm:$0xff]  }
   0x7   :  { %859 = vmatpush3.bf16.msra.mxu0 %v955_v4  ;;  %878 = vmatprep.subr.bf16.mxu1 %v963_v12  ;;  %v970_v29 = vld [vmem:[%s1198_s4 + $0x38] sm:$0xff]   ;;  %v971_v30 = vld [vmem:[%s1199_s6] sm:$0xff]   ;;  %v972_v31 = vld [vmem:[%s1199_s6 + $0x8] sm:$0xff]  }
   0x8   :  { %860 = vmatprep.subr.bf16.mxu0 %v956_v5  ;;  %879 = vmatpush3.bf16.msra.mxu1 %v963_v12  ;;  %v973_v32 = vld [vmem:[%s1199_s6 + $0x10] sm:$0xff]   ;;  %v974_v33 = vld [vmem:[%s1199_s6 + $0x18] sm:$0xff]   ;;  %v975_v34 = vld [vmem:[%s1199_s6 + $0x20] sm:$0xff]  }
   0x9   :  { %880 = vmatprep.subr.bf16.mxu1 %v964_v13  ;;  %v976_v35 = vld [vmem:[%s1199_s6 + $0x28] sm:$0xff]   ;;  %v758_v36 = vld [vmem:[%s1200_s3] ss:$0 sm:$0xff]  ;;  %v977_v51 = vld [vmem:[%s1199_s6 + $0x30] sm:$0xff]  }
   0xa   :  { %v978_v52 = vld [vmem:[%s1199_s6 + $0x38] sm:$0xff]   ;;  %v979_v53 = vld [vmem:[%s1201_s8] sm:$0xff]   ;;  %v980_v54 = vld [vmem:[%s1201_s8 + $0x8] sm:$0xff]  }
   0xb   :  { %861 = vmatpush3.bf16.msra.mxu0 %v956_v5  ;;  %v981_v55 = vld [vmem:[%s1201_s8 + $0x10] sm:$0xff]   ;;  %v982_v56 = vld [vmem:[%s1201_s8 + $0x18] sm:$0xff]   ;;  %v983_v57 = vld [vmem:[%s1201_s8 + $0x20] sm:$0xff]  }
   0xc   :  { %862 = vmatprep.subr.bf16.mxu0 %v957_v6  ;;  %881 = vmatpush3.bf16.msra.mxu1 %v964_v13  ;;  %v984_v58 = vld [vmem:[%s1201_s8 + $0x28] sm:$0xff]   ;;  %v767_v60 = vld [vmem:[%s1202_s5] ss:$0 sm:$0xff] }
   0xd   :  { %882 = vmatprep.subr.bf16.mxu1 %v965_v14 }
   0xf   :  { %863 = vmatpush3.bf16.msra.mxu0 %v957_v6 }
  0x10   :  { %864 = vmatprep.subr.bf16.mxu0 %v958_v7  ;;  %883 = vmatpush3.bf16.msra.mxu1 %v965_v14 }
  0x11   :  { %884 = vmatprep.subr.bf16.mxu1 %v966_v15 }
  0x13   :  { %865 = vmatpush3.bf16.msra.mxu0 %v958_v7 }
  0x14   :  { %866 = vmatprep.subr.bf16.mxu0 %v959_v8  ;;  %885 = vmatpush3.bf16.msra.mxu1 %v966_v15 }
  0x15   :  { %886 = vmatprep.subr.bf16.mxu1 %v967_v16 }
  0x17   :  { %867 = vmatpush3.bf16.msra.mxu0 %v959_v8  ;;  %v985_v8 = vld [vmem:[%s1201_s8 + $0x30] sm:$0xff]  }
  0x18   :  { %868 = vmatprep.subr.bf16.mxu0 %v960_v9  ;;  %887 = vmatpush3.bf16.msra.mxu1 %v967_v16 }
  0x19   :  { %888 = vmatprep.subr.bf16.mxu1 %v968_v17 }
  0x1b   :  { %869 = vmatpush3.bf16.msra.mxu0 %v960_v9  ;;  %v986_v9 = vld [vmem:[%s1201_s8 + $0x38] sm:$0xff]  }
  0x1c   :  { %870 = vmatprep.subr.bf16.mxu0 %v961_v10  ;;  %889 = vmatpush3.bf16.msra.mxu1 %v968_v17 }
  0x1d   :  { %890 = vmatprep.subr.bf16.mxu1 %v969_v28 }
  0x1f   :  { %871 = vmatpush3.bf16.msra.mxu0 %v961_v10  ;;  %v776_v10 = vld [vmem:[%s1203_s7] ss:$0 sm:$0xff] }
  0x20   :  { %872 = vmatprep.subr.bf16.mxu0 %v962_v11  ;;  %891 = vmatpush3.bf16.msra.mxu1 %v969_v28 }
  0x21   :  { %892 = vmatprep.subr.bf16.mxu1 %v970_v29 }
  0x23   :  { %873 = vmatpush3.bf16.msra.mxu0 %v962_v11 }
  0x24   :  { %893 = vmatpush3.bf16.msra.mxu1 %v970_v29  ;;  %898 = vmatprep.subr.bf16.mxu0 %v971_v30 }
  0x25   :  { %918 = vmatprep.subr.bf16.mxu1 %v979_v53 }
  0xd9   :  { %v89_v18 = vpop.f32.mrb[0].mxu0  ;;  %v141_v19 = vpop.f32.mrb[0].mxu1 }
  0xda   :  { %v850_v20 = vpop.f32.mrb[1].mxu0  ;;  %v856_v21 = vpop.f32.mrb[1].mxu1 }
  0xdb   :  { %v92_v22 = vpop.f32.mrb[2].mxu0  ;;  %v144_v24 = vpop.f32.mrb[2].mxu1 }
  0xdc   :  { %v188_v23 = vpack.c.bf16 %v92_v22, %v89_v18  ;;  %v851_v25 = vpop.f32.mrb[3].mxu0  ;;  %v189_v26 = vpack.c.bf16 %v144_v24, %v141_v19  ;;  %v857_v27 = vpop.f32.mrb[3].mxu1 }
  0xde   :  { %874 = vmatprep.mubr.bf16.mxu0 %v188_v23 }
  0xdf   :  { %875 = vmatmul.mubr.bf16.vlgmr.msra.gmra.mrb[4].mxu0 %v189_v26  ;;  %v785_v26 = vld [vmem:[%s1204_s9] ss:$0 sm:$0xff] }
  0xe0   :  { %899 = vmatpush3.bf16.msra.mxu0 %v971_v30 }
  0xe1   :  { %900 = vmatprep.subr.bf16.mxu0 %v972_v31 }
  0xe4   :  { %901 = vmatpush3.bf16.msra.mxu0 %v972_v31 }
  0xe5   :  { %902 = vmatprep.subr.bf16.mxu0 %v973_v32 }
  0xe8   :  { %903 = vmatpush3.bf16.msra.mxu0 %v973_v32 }
  0xe9   :  { %904 = vmatprep.subr.bf16.mxu0 %v974_v33 }
  0xec   :  { %905 = vmatpush3.bf16.msra.mxu0 %v974_v33 }
  0xed   :  { %906 = vmatprep.subr.bf16.mxu0 %v975_v34 }
  0xf0   :  { %907 = vmatpush3.bf16.msra.mxu0 %v975_v34 }
  0xf1   :  { %908 = vmatprep.subr.bf16.mxu0 %v976_v35 }
  0xf4   :  { %909 = vmatpush3.bf16.msra.mxu0 %v976_v35 }
  0xf5   :  { %910 = vmatprep.subr.bf16.mxu0 %v977_v51 }
  0xf8   :  { %911 = vmatpush3.bf16.msra.mxu0 %v977_v51 }
  0xf9   :  { %912 = vmatprep.subr.bf16.mxu0 %v978_v52 }
  0xfc   :  { %913 = vmatpush3.bf16.msra.mxu0 %v978_v52 }
  0xfd   :  { %938 = vmatprep.subr.bf16.mxu0 %v987_v0 }
 0x1b2   :  { %v876_v37 = vpop.f32.mrb[4].mxu0 }
 0x1b3   :  { %v287_v38 = vadd.f32 %v876_v37, %v758_v36  ;;  %v278_v39 = vpop.f32.mrb[5].mxu0 }
 0x1b4   :  { %v279_v40 = vadd.f32 %v758_v36, %v278_v39  ;;  %v877_v41 = vpop.f32.mrb[6].mxu0 }
 0x1b5   :  { %v290_v42 = vadd.f32 %v877_v41, %v758_v36  ;;  %v281_v43 = vpop.f32.mrb[7].mxu0  ;;  %v295_v45 = vmax.f32 %v287_v38, 0.0 }
 0x1b6   :  { %v282_v44 = vadd.f32 %v758_v36, %v281_v43  ;;  %v293_v47 = vmax.f32 %v279_v40, 0.0 }
 0x1b7   :  { %v296_v46 = vmax.f32 %v290_v42, 0.0 }
 0x1b8   :  { %v294_v48 = vmax.f32 %v282_v44, 0.0 }
 0x1b9   :  { %v298_v49 = vpack.c.bf16 %v296_v46, %v295_v45 }
 0x1ba   :  { %v297_v50 = vpack.c.bf16 %v294_v48, %v293_v47 }
 0x1bc   :  { %894 = vmatprep.mubr.bf16.mxu1 %v297_v50 }
 0x1bd   :  { %895 = vmatmul.mubr.bf16.vlgmr.msra.gmra.mrb[4].mxu1 %v298_v49 }
 0x1be   :  { %919 = vmatpush3.bf16.msra.mxu1 %v979_v53 }
 0x1bf   :  { %920 = vmatprep.subr.bf16.mxu1 %v980_v54 }
 0x1c2   :  { %921 = vmatpush3.bf16.msra.mxu1 %v980_v54 }
 0x1c3   :  { %922 = vmatprep.subr.bf16.mxu1 %v981_v55 }
 0x1c6   :  { %923 = vmatpush3.bf16.msra.mxu1 %v981_v55 }
 0x1c7   :  { %924 = vmatprep.subr.bf16.mxu1 %v982_v56 }
 0x1ca   :  { %925 = vmatpush3.bf16.msra.mxu1 %v982_v56 }
 0x1cb   :  { %926 = vmatprep.subr.bf16.mxu1 %v983_v57 }
 0x1ce   :  { %927 = vmatpush3.bf16.msra.mxu1 %v983_v57 }
 0x1cf   :  { %928 = vmatprep.subr.bf16.mxu1 %v984_v58 }
 0x1d2   :  { %929 = vmatpush3.bf16.msra.mxu1 %v984_v58 }
 0x1d3   :  { %930 = vmatprep.subr.bf16.mxu1 %v985_v8 }
 0x1d6   :  { %931 = vmatpush3.bf16.msra.mxu1 %v985_v8 }
 0x1d7   :  { %932 = vmatprep.subr.bf16.mxu1 %v986_v9 }
 0x1da   :  { %933 = vmatpush3.bf16.msra.mxu1 %v986_v9 }
 0x1db   :  { %944 = vmatprep.subr.bf16.mxu1 %v987_v0 }
 0x290   :  { %v896_v59 = vpop.f32.mrb[4].mxu1 }
 0x291   :  { %v387_v61 = vpop.f32.mrb[5].mxu1  ;;  %v396_v63 = vadd.f32 %v896_v59, %v767_v60 }
 0x292   :  { %v897_v62 = vpop.f32.mrb[6].mxu1  ;;  %v388_v4 = vadd.f32 %v767_v60, %v387_v61 }
 0x293   :  { %v399_v1 = vadd.f32 %v897_v62, %v767_v60  ;;  %v390_v2 = vpop.f32.mrb[7].mxu1 }
 0x294   :  { %v391_v5 = vadd.f32 %v767_v60, %v390_v2 }
 0x295   :  { %v437_v6 = vpack.c.bf16 %v399_v1, %v396_v63 }
 0x296   :  { %v436_v7 = vpack.c.bf16 %v391_v5, %v388_v4 }
 0x298   :  { %914 = vmatprep.mubr.bf16.mxu0 %v436_v7 }
 0x299   :  { %915 = vmatmul.mubr.bf16.vlgmr.msra.gmra.mrb[8].mxu0 %v437_v6 }
 0x29a   :  { %940 = vmatprep.mubr.msk.bf16.mxu0 %vm988_vm0, %v987_v0 }
 0x36c   :  { %v916_v11 = vpop.f32.mrb[8].mxu0 }
 0x36d   :  { %v535_v12 = vadd.f32 %v916_v11, %v776_v10  ;;  %v526_v13 = vpop.f32.mrb[9].mxu0 }
 0x36e   :  { %v527_v14 = vadd.f32 %v776_v10, %v526_v13  ;;  %v917_v15 = vpop.f32.mrb[10].mxu0 }
 0x36f   :  { %v538_v16 = vadd.f32 %v917_v15, %v776_v10  ;;  %v529_v17 = vpop.f32.mrb[11].mxu0  ;;  %v543_v19 = vmax.f32 %v535_v12, 0.0 }
 0x370   :  { %v530_v18 = vadd.f32 %v776_v10, %v529_v17  ;;  %v541_v21 = vmax.f32 %v527_v14, 0.0 }
 0x371   :  { %v544_v20 = vmax.f32 %v538_v16, 0.0 }
 0x372   :  { %v542_v22 = vmax.f32 %v530_v18, 0.0 }
 0x373   :  { %v546_v23 = vpack.c.bf16 %v544_v20, %v543_v19 }
 0x374   :  { %v545_v24 = vpack.c.bf16 %v542_v22, %v541_v21 }
 0x376   :  { %934 = vmatprep.mubr.bf16.mxu1 %v545_v24 }
 0x377   :  { %935 = vmatmul.mubr.bf16.vlgmr.msra.gmra.mrb[8].mxu1 %v546_v23 }
 0x378   :  { %946 = vmatprep.mubr.msk.bf16.mxu1 %vm988_vm0, %v987_v0 }
 0x44a   :  { %v936_v25 = vpop.f32.mrb[8].mxu1 }
 0x44b   :  { %v635_v27 = vpop.f32.mrb[9].mxu1  ;;  %v644_v29 = vadd.f32 %v936_v25, %v785_v26 }
 0x44c   :  { %v937_v28 = vpop.f32.mrb[10].mxu1  ;;  %v636_v32 = vadd.f32 %v785_v26, %v635_v27 }
 0x44d   :  { %v647_v30 = vadd.f32 %v937_v28, %v785_v26  ;;  %v638_v31 = vpop.f32.mrb[11].mxu1 }
 0x44e   :  { %v639_v33 = vadd.f32 %v785_v26, %v638_v31 }
 0x44f   :  { %v702_v34 = vpack.c.bf16 %v647_v30, %v644_v29 }
 0x450   :  { %v656_v35 = vpack.c.bf16 %v639_v33, %v636_v32 }
 0x451   :  { %945 = vmatpush3.bf16.msra.mxu1 %v702_v34 }
 0x452   :  { %939 = vmatpush3.bf16.msra.mxu0 %v656_v35 }
 0x454   :  { %947 = vmatmul.mubr.msk.bf16.vlgmr.msra.gmra.mrb[12].mxu1 %vm51_vm1, %v1059_v3 }
 0x455   :  { %941 = vmatmul.mubr.msk.bf16.vlgmr.msra.gmra.mrb[12].mxu0 %vm51_vm1, %v1059_v3 }
 0x527   :  { %v737_v0 = vpop.f32.mrb[12].mxu1 }
 0x528   :  { %v691_v36 = vpop.f32.mrb[12].mxu0  ;;  %796 = vst [vmem:[%s1205_s10 + $0x10] sm:$0xff] %v737_v0  ;;  %v948_v37 = vpop.f32.mrb[13].mxu1 }
 0x529   :  { %698 = vst [vmem:[%s1205_s10] sm:$0xff] %v691_v36  ;;  %v942_v38 = vpop.f32.mrb[13].mxu0  ;;  %v740_v39 = vpop.f32.mrb[14].mxu1 }
 0x52a   :  { %v694_v40 = vpop.f32.mrb[14].mxu0  ;;  %797 = vst [vmem:[%s1205_s10 + $0x18] sm:$0xff] %v740_v39  ;;  %v949_v41 = vpop.f32.mrb[15].mxu1 }
 0x52b   :  { %699 = vst [vmem:[%s1205_s10 + $0x8] sm:$0xff] %v694_v40  ;;  %v943_v3 = vpop.f32.mrb[15].mxu0 }

// kernel: _fourier_flow_impl.1
= control target key start
LH: loop header
LB: loop body
LE: loop exit
PB: predicated region body
PF: predicated region fallthrough
CT: control target
= control target key end

     0   :  { %v987_v0 = vmov 0.0   ;;  %vm988_vm0 = vmmov 0   ;;  %vm51_vm1 = vcmask 130048   ;;  %s1195_s0 = inlined_call_operand.vmem [shape: bf16[2,16,128], index: 0, kind: input, shape index: {}]   ;;  %s1196_s1 = inlined_call_operand.vmem [shape: bf16[16,16], index: 1, kind: input, shape index: {}]   ;;  %s1197_s2 = inlined_call_operand.vmem [shape: bf16[128,128], index: 2, kind: input, shape index: {}]   ;;  %s1198_s4 = inlined_call_operand.vmem [shape: bf16[128,128], index: 4, kind: input, shape index: {}]   ;;  %s1199_s6 = inlined_call_operand.vmem [shape: bf16[128,128], index: 6, kind: input, shape index: {}]   ;;  %s1200_s3 = inlined_call_operand.vmem [shape: f32[1,128], index: 3, kind: input, shape index: {}]   ;;  %s1201_s8 = inlined_call_operand.vmem [shape: bf16[128,128], index: 8, kind: input, shape index: {}]   ;;  %s1202_s5 = inlined_call_operand.vmem [shape: f32[1,128], index: 5, kind: input, shape index: {}]   ;;  %s1203_s7 = inlined_call_operand.vmem [shape: f32[1,128], index: 7, kind: input, shape index: {}]   ;;  %s1204_s9 = inlined_call_operand.vmem [shape: f32[1,128], index: 9, kind: input, shape index: {}]   ;;  %s1205_s10 = inlined_call_operand.vmem [shape: f32[2,16,128], index: 10, kind: output, shape index: {}]  }
   0x1   :  { %846 = vmatprep.subr.bf16.mxu0 %v987_v0  ;;  %852 = vmatprep.subr.bf16.mxu1 %v987_v0  ;;  %v952_v1 = vld [vmem:[%s1195_s0] sm:$0xff]   ;;  %v953_v2 = vld [vmem:[%s1195_s0 + $0x8] sm:$0xff]   ;;  %v957_v6 = vld [vmem:[%s1197_s2 + $0x10] sm:$0xff]  }
   0x2   :  { %848 = vmatprep.mubr.msk.bf16.mxu0 %vm988_vm0, %v987_v0  ;;  %854 = vmatprep.mubr.msk.bf16.mxu1 %vm988_vm0, %v987_v0  ;;  %v1059_v3 = vld [vmem:[%s1196_s1] sm:$0xff]   ;;  %v956_v5 = vld [vmem:[%s1197_s2 + $0x8] sm:$0xff]   ;;  %v958_v7 = vld [vmem:[%s1197_s2 + $0x18] sm:$0xff]  }
   0x3   :  { %847 = vmatpush3.bf16.msra.mxu0 %v952_v1  ;;  %853 = vmatpush3.bf16.msra.mxu1 %v953_v2  ;;  %v955_v4 = vld [vmem:[%s1197_s2] sm:$0xff]   ;;  %v960_v9 = vld [vmem:[%s1197_s2 + $0x28] sm:$0xff]   ;;  %v961_v10 = vld [vmem:[%s1197_s2 + $0x30] sm:$0xff]  }
   0x4   :  { %858 = vmatprep.subr.bf16.mxu0 %v955_v4  ;;  %v959_v8 = vld [vmem:[%s1197_s2 + $0x20] sm:$0xff]   ;;  %v962_v11 = vld [vmem:[%s1197_s2 + $0x38] sm:$0xff]   ;;  %v964_v13 = vld [vmem:[%s1198_s4 + $0x8] sm:$0xff]  }
   0x5   :  { %v963_v12 = vld [vmem:[%s1198_s4] sm:$0xff]   ;;  %v965_v14 = vld [vmem:[%s1198_s4 + $0x10] sm:$0xff]   ;;  %v966_v15 = vld [vmem:[%s1198_s4 + $0x18] sm:$0xff]  }
   0x6   :  { %849 = vmatmul.mubr.msk.bf16.vlgmr.msra.gmra.mrb[0].mxu0 %vm51_vm1, %v1059_v3  ;;  %855 = vmatmul.mubr.msk.bf16.vlgmr.msra.gmra.mrb[0].mxu1 %vm51_vm1, %v1059_v3  ;;  %v967_v16 = vld [vmem:[%s1198_s4 + $0x20] sm:$0xff]   ;;  %v968_v17 = vld [vmem:[%s1198_s4 + $0x28] sm:$0xff]   ;;  %v969_v28 = vld [vmem:[%s1198_s4 + $0x30] sm:$0xff]  }
   0x7   :  { %859 = vmatpush3.bf16.msra.mxu0 %v955_v4  ;;  %878 = vmatprep.subr.bf16.mxu1 %v963_v12  ;;  %v970_v29 = vld [vmem:[%s1198_s4 + $0x38] sm:$0xff]   ;;  %v971_v30 = vld [vmem:[%s1199_s6] sm:$0xff]   ;;  %v972_v31 = vld [vmem:[%s1199_s6 + $0x8] sm:$0xff]  }
   0x8   :  { %860 = vmatprep.subr.bf16.mxu0 %v956_v5  ;;  %879 = vmatpush3.bf16.msra.mxu1 %v963_v12  ;;  %v973_v32 = vld [vmem:[%s1199_s6 + $0x10] sm:$0xff]   ;;  %v974_v33 = vld [vmem:[%s1199_s6 + $0x18] sm:$0xff]   ;;  %v975_v34 = vld [vmem:[%s1199_s6 + $0x20] sm:$0xff]  }
   0x9   :  { %880 = vmatprep.subr.bf16.mxu1 %v964_v13  ;;  %v976_v35 = vld [vmem:[%s1199_s6 + $0x28] sm:$0xff]   ;;  %v758_v36 = vld [vmem:[%s1200_s3] ss:$0 sm:$0xff]  ;;  %v977_v51 = vld [vmem:[%s1199_s6 + $0x30] sm:$0xff]  }
   0xa   :  { %v978_v52 = vld [vmem:[%s1199_s6 + $0x38] sm:$0xff]   ;;  %v979_v53 = vld [vmem:[%s1201_s8] sm:$0xff]   ;;  %v980_v54 = vld [vmem:[%s1201_s8 + $0x8] sm:$0xff]  }
   0xb   :  { %861 = vmatpush3.bf16.msra.mxu0 %v956_v5  ;;  %v981_v55 = vld [vmem:[%s1201_s8 + $0x10] sm:$0xff]   ;;  %v982_v56 = vld [vmem:[%s1201_s8 + $0x18] sm:$0xff]   ;;  %v983_v57 = vld [vmem:[%s1201_s8 + $0x20] sm:$0xff]  }
   0xc   :  { %862 = vmatprep.subr.bf16.mxu0 %v957_v6  ;;  %881 = vmatpush3.bf16.msra.mxu1 %v964_v13  ;;  %v984_v58 = vld [vmem:[%s1201_s8 + $0x28] sm:$0xff]   ;;  %v767_v60 = vld [vmem:[%s1202_s5] ss:$0 sm:$0xff] }
   0xd   :  { %882 = vmatprep.subr.bf16.mxu1 %v965_v14 }
   0xf   :  { %863 = vmatpush3.bf16.msra.mxu0 %v957_v6 }
  0x10   :  { %864 = vmatprep.subr.bf16.mxu0 %v958_v7  ;;  %883 = vmatpush3.bf16.msra.mxu1 %v965_v14 }
  0x11   :  { %884 = vmatprep.subr.bf16.mxu1 %v966_v15 }
  0x13   :  { %865 = vmatpush3.bf16.msra.mxu0 %v958_v7 }
  0x14   :  { %866 = vmatprep.subr.bf16.mxu0 %v959_v8  ;;  %885 = vmatpush3.bf16.msra.mxu1 %v966_v15 }
  0x15   :  { %886 = vmatprep.subr.bf16.mxu1 %v967_v16 }
  0x17   :  { %867 = vmatpush3.bf16.msra.mxu0 %v959_v8  ;;  %v985_v8 = vld [vmem:[%s1201_s8 + $0x30] sm:$0xff]  }
  0x18   :  { %868 = vmatprep.subr.bf16.mxu0 %v960_v9  ;;  %887 = vmatpush3.bf16.msra.mxu1 %v967_v16 }
  0x19   :  { %888 = vmatprep.subr.bf16.mxu1 %v968_v17 }
  0x1b   :  { %869 = vmatpush3.bf16.msra.mxu0 %v960_v9  ;;  %v986_v9 = vld [vmem:[%s1201_s8 + $0x38] sm:$0xff]  }
  0x1c   :  { %870 = vmatprep.subr.bf16.mxu0 %v961_v10  ;;  %889 = vmatpush3.bf16.msra.mxu1 %v968_v17 }
  0x1d   :  { %890 = vmatprep.subr.bf16.mxu1 %v969_v28 }
  0x1f   :  { %871 = vmatpush3.bf16.msra.mxu0 %v961_v10  ;;  %v776_v10 = vld [vmem:[%s1203_s7] ss:$0 sm:$0xff] }
  0x20   :  { %872 = vmatprep.subr.bf16.mxu0 %v962_v11  ;;  %891 = vmatpush3.bf16.msra.mxu1 %v969_v28 }
  0x21   :  { %892 = vmatprep.subr.bf16.mxu1 %v970_v29 }
  0x23   :  { %873 = vmatpush3.bf16.msra.mxu0 %v962_v11 }
  0x24   :  { %893 = vmatpush3.bf16.msra.mxu1 %v970_v29  ;;  %898 = vmatprep.subr.bf16.mxu0 %v971_v30 }
  0x25   :  { %918 = vmatprep.subr.bf16.mxu1 %v979_v53 }
  0xd9   :  { %v89_v18 = vpop.f32.mrb[0].mxu0  ;;  %v141_v19 = vpop.f32.mrb[0].mxu1 }
  0xda   :  { %v850_v20 = vpop.f32.mrb[1].mxu0  ;;  %v856_v21 = vpop.f32.mrb[1].mxu1 }
  0xdb   :  { %v92_v22 = vpop.f32.mrb[2].mxu0  ;;  %v144_v24 = vpop.f32.mrb[2].mxu1 }
  0xdc   :  { %v188_v23 = vpack.c.bf16 %v92_v22, %v89_v18  ;;  %v851_v25 = vpop.f32.mrb[3].mxu0  ;;  %v189_v26 = vpack.c.bf16 %v144_v24, %v141_v19  ;;  %v857_v27 = vpop.f32.mrb[3].mxu1 }
  0xde   :  { %874 = vmatprep.mubr.bf16.mxu0 %v188_v23 }
  0xdf   :  { %875 = vmatmul.mubr.bf16.vlgmr.msra.gmra.mrb[4].mxu0 %v189_v26  ;;  %v785_v26 = vld [vmem:[%s1204_s9] ss:$0 sm:$0xff] }
  0xe0   :  { %899 = vmatpush3.bf16.msra.mxu0 %v971_v30 }
  0xe1   :  { %900 = vmatprep.subr.bf16.mxu0 %v972_v31 }
  0xe4   :  { %901 = vmatpush3.bf16.msra.mxu0 %v972_v31 }
  0xe5   :  { %902 = vmatprep.subr.bf16.mxu0 %v973_v32 }
  0xe8   :  { %903 = vmatpush3.bf16.msra.mxu0 %v973_v32 }
  0xe9   :  { %904 = vmatprep.subr.bf16.mxu0 %v974_v33 }
  0xec   :  { %905 = vmatpush3.bf16.msra.mxu0 %v974_v33 }
  0xed   :  { %906 = vmatprep.subr.bf16.mxu0 %v975_v34 }
  0xf0   :  { %907 = vmatpush3.bf16.msra.mxu0 %v975_v34 }
  0xf1   :  { %908 = vmatprep.subr.bf16.mxu0 %v976_v35 }
  0xf4   :  { %909 = vmatpush3.bf16.msra.mxu0 %v976_v35 }
  0xf5   :  { %910 = vmatprep.subr.bf16.mxu0 %v977_v51 }
  0xf8   :  { %911 = vmatpush3.bf16.msra.mxu0 %v977_v51 }
  0xf9   :  { %912 = vmatprep.subr.bf16.mxu0 %v978_v52 }
  0xfc   :  { %913 = vmatpush3.bf16.msra.mxu0 %v978_v52 }
  0xfd   :  { %938 = vmatprep.subr.bf16.mxu0 %v987_v0 }
 0x1b2   :  { %v876_v37 = vpop.f32.mrb[4].mxu0 }
 0x1b3   :  { %v287_v38 = vadd.f32 %v876_v37, %v758_v36  ;;  %v278_v39 = vpop.f32.mrb[5].mxu0 }
 0x1b4   :  { %v279_v40 = vadd.f32 %v758_v36, %v278_v39  ;;  %v877_v41 = vpop.f32.mrb[6].mxu0 }
 0x1b5   :  { %v290_v42 = vadd.f32 %v877_v41, %v758_v36  ;;  %v281_v43 = vpop.f32.mrb[7].mxu0  ;;  %v295_v45 = vmax.f32 %v287_v38, 0.0 }
 0x1b6   :  { %v282_v44 = vadd.f32 %v758_v36, %v281_v43  ;;  %v293_v47 = vmax.f32 %v279_v40, 0.0 }
 0x1b7   :  { %v296_v46 = vmax.f32 %v290_v42, 0.0 }
 0x1b8   :  { %v294_v48 = vmax.f32 %v282_v44, 0.0 }
 0x1b9   :  { %v298_v49 = vpack.c.bf16 %v296_v46, %v295_v45 }
 0x1ba   :  { %v297_v50 = vpack.c.bf16 %v294_v48, %v293_v47 }
 0x1bc   :  { %894 = vmatprep.mubr.bf16.mxu1 %v297_v50 }
 0x1bd   :  { %895 = vmatmul.mubr.bf16.vlgmr.msra.gmra.mrb[4].mxu1 %v298_v49 }
 0x1be   :  { %919 = vmatpush3.bf16.msra.mxu1 %v979_v53 }
 0x1bf   :  { %920 = vmatprep.subr.bf16.mxu1 %v980_v54 }
 0x1c2   :  { %921 = vmatpush3.bf16.msra.mxu1 %v980_v54 }
 0x1c3   :  { %922 = vmatprep.subr.bf16.mxu1 %v981_v55 }
 0x1c6   :  { %923 = vmatpush3.bf16.msra.mxu1 %v981_v55 }
 0x1c7   :  { %924 = vmatprep.subr.bf16.mxu1 %v982_v56 }
 0x1ca   :  { %925 = vmatpush3.bf16.msra.mxu1 %v982_v56 }
 0x1cb   :  { %926 = vmatprep.subr.bf16.mxu1 %v983_v57 }
 0x1ce   :  { %927 = vmatpush3.bf16.msra.mxu1 %v983_v57 }
 0x1cf   :  { %928 = vmatprep.subr.bf16.mxu1 %v984_v58 }
 0x1d2   :  { %929 = vmatpush3.bf16.msra.mxu1 %v984_v58 }
 0x1d3   :  { %930 = vmatprep.subr.bf16.mxu1 %v985_v8 }
 0x1d6   :  { %931 = vmatpush3.bf16.msra.mxu1 %v985_v8 }
 0x1d7   :  { %932 = vmatprep.subr.bf16.mxu1 %v986_v9 }
 0x1da   :  { %933 = vmatpush3.bf16.msra.mxu1 %v986_v9 }
 0x1db   :  { %944 = vmatprep.subr.bf16.mxu1 %v987_v0 }
 0x290   :  { %v896_v59 = vpop.f32.mrb[4].mxu1 }
 0x291   :  { %v387_v61 = vpop.f32.mrb[5].mxu1  ;;  %v396_v63 = vadd.f32 %v896_v59, %v767_v60 }
 0x292   :  { %v897_v62 = vpop.f32.mrb[6].mxu1  ;;  %v388_v4 = vadd.f32 %v767_v60, %v387_v61 }
 0x293   :  { %v399_v1 = vadd.f32 %v897_v62, %v767_v60  ;;  %v390_v2 = vpop.f32.mrb[7].mxu1 }
 0x294   :  { %v391_v5 = vadd.f32 %v767_v60, %v390_v2 }
 0x295   :  { %v437_v6 = vpack.c.bf16 %v399_v1, %v396_v63 }
 0x296   :  { %v436_v7 = vpack.c.bf16 %v391_v5, %v388_v4 }
 0x298   :  { %914 = vmatprep.mubr.bf16.mxu0 %v436_v7 }
 0x299   :  { %915 = vmatmul.mubr.bf16.vlgmr.msra.gmra.mrb[8].mxu0 %v437_v6 }
 0x29a   :  { %940 = vmatprep.mubr.msk.bf16.mxu0 %vm988_vm0, %v987_v0 }
 0x36c   :  { %v916_v11 = vpop.f32.mrb[8].mxu0 }
 0x36d   :  { %v535_v12 = vadd.f32 %v916_v11, %v776_v10  ;;  %v526_v13 = vpop.f32.mrb[9].mxu0 }
 0x36e   :  { %v527_v14 = vadd.f32 %v776_v10, %v526_v13  ;;  %v917_v15 = vpop.f32.mrb[10].mxu0 }
 0x36f   :  { %v538_v16 = vadd.f32 %v917_v15, %v776_v10  ;;  %v529_v17 = vpop.f32.mrb[11].mxu0  ;;  %v543_v19 = vmax.f32 %v535_v12, 0.0 }
 0x370   :  { %v530_v18 = vadd.f32 %v776_v10, %v529_v17  ;;  %v541_v21 = vmax.f32 %v527_v14, 0.0 }
 0x371   :  { %v544_v20 = vmax.f32 %v538_v16, 0.0 }
 0x372   :  { %v542_v22 = vmax.f32 %v530_v18, 0.0 }
 0x373   :  { %v546_v23 = vpack.c.bf16 %v544_v20, %v543_v19 }
 0x374   :  { %v545_v24 = vpack.c.bf16 %v542_v22, %v541_v21 }
 0x376   :  { %934 = vmatprep.mubr.bf16.mxu1 %v545_v24 }
 0x377   :  { %935 = vmatmul.mubr.bf16.vlgmr.msra.gmra.mrb[8].mxu1 %v546_v23 }
 0x378   :  { %946 = vmatprep.mubr.msk.bf16.mxu1 %vm988_vm0, %v987_v0 }
 0x44a   :  { %v936_v25 = vpop.f32.mrb[8].mxu1 }
 0x44b   :  { %v635_v27 = vpop.f32.mrb[9].mxu1  ;;  %v644_v29 = vadd.f32 %v936_v25, %v785_v26 }
 0x44c   :  { %v937_v28 = vpop.f32.mrb[10].mxu1  ;;  %v636_v32 = vadd.f32 %v785_v26, %v635_v27 }
 0x44d   :  { %v647_v30 = vadd.f32 %v937_v28, %v785_v26  ;;  %v638_v31 = vpop.f32.mrb[11].mxu1 }
 0x44e   :  { %v639_v33 = vadd.f32 %v785_v26, %v638_v31 }
 0x44f   :  { %v702_v34 = vpack.c.bf16 %v647_v30, %v644_v29 }
 0x450   :  { %v656_v35 = vpack.c.bf16 %v639_v33, %v636_v32 }
 0x451   :  { %945 = vmatpush3.bf16.msra.mxu1 %v702_v34 }
 0x452   :  { %939 = vmatpush3.bf16.msra.mxu0 %v656_v35 }
 0x454   :  { %947 = vmatmul.mubr.msk.bf16.vlgmr.msra.gmra.mrb[12].mxu1 %vm51_vm1, %v1059_v3 }
 0x455   :  { %941 = vmatmul.mubr.msk.bf16.vlgmr.msra.gmra.mrb[12].mxu0 %vm51_vm1, %v1059_v3 }
 0x527   :  { %v737_v0 = vpop.f32.mrb[12].mxu1 }
 0x528   :  { %v691_v36 = vpop.f32.mrb[12].mxu0  ;;  %796 = vst [vmem:[%s1205_s10 + $0x10] sm:$0xff] %v737_v0  ;;  %v948_v37 = vpop.f32.mrb[13].mxu1 }
 0x529   :  { %698 = vst [vmem:[%s1205_s10] sm:$0xff] %v691_v36  ;;  %v942_v38 = vpop.f32.mrb[13].mxu0  ;;  %v740_v39 = vpop.f32.mrb[14].mxu1 }
 0x52a   :  { %v694_v40 = vpop.f32.mrb[14].mxu0  ;;  %797 = vst [vmem:[%s1205_s10 + $0x18] sm:$0xff] %v740_v39  ;;  %v949_v41 = vpop.f32.mrb[15].mxu1 }
 0x52b   :  { %699 = vst [vmem:[%s1205_s10 + $0x8] sm:$0xff] %v694_v40  ;;  %v943_v3 = vpop.f32.mrb[15].mxu0 }

</bundles_post_ra>
